<compile_context>
chip_gen: v7x
topology: tpu7x:2x2x1
jax: 0.10.0
libtpu: 0.0.40
codegen_flags: <defaults>
</compile_context>

<pallas_src>
import jax
import jax.numpy as jnp
import numpy as np
from jax import lax
from jax.experimental import pallas as pl
from jax.experimental.pallas import tpu as pltpu

# Shapes consistent with Conv2d(4, 8, kernel_size=3, padding=1) on a 2x4x16x16 input.
N, CIN, H, W = 2, 4, 16, 16
COUT, KH, KW = 8, 3, 3
PAD = 1                      # stride 1, "same" padding
BN_MOMENTUM = 0.1            # nn.BatchNorm2d default

KSZ = KH * KW * CIN          # GEMM contraction depth (36)
M = N * H * W                # GEMM lane dimension (512)
BM = 256                     # lane block per grid step (multiple of 128)
NB = M // BM                 # grid size (2)
assert M % BM == 0


def conv_track_kernel(w_ref, p_ref, b_ref, out_ref, mean_ref, m2_ref):
    """One grid step produces a (COUT, BM) lane-dense slab of the conv output.

    w_ref   : (COUT, KSZ)    reshaped conv weights
    p_ref   : (KSZ, BM)      im2col patch block (lane-dense)
    b_ref   : (COUT, 1)      bias
    out_ref : (COUT, BM)     conv output slab (lane-dense -> unmasked stores)
    mean_ref: (1, COUT, 1)   per-block per-channel mean
    m2_ref  : (1, COUT, 1)   per-block per-channel sum of squared deviations
    """
    # Single implicit-GEMM on the MXU, f32 accumulation.
    acc = jnp.dot(w_ref[...], p_ref[...], preferred_element_type=jnp.float32)
    acc = acc + b_ref[...]                                   # lane-broadcast bias
    out_ref[...] = acc.astype(out_ref.dtype)

    # BatchNorm tracking stats on the lane-dense layout (two-pass, centered).
    inv_cnt = 1.0 / float(acc.shape[1])
    bm = jnp.sum(acc, axis=1, keepdims=True) * inv_cnt       # (COUT, 1)
    centered = acc - bm
    m2 = jnp.sum(centered * centered, axis=1, keepdims=True) # (COUT, 1)
    mean_ref[0] = bm
    m2_ref[0] = m2


def _im2col_T(x_nchw):
    """(N, CIN, H, W) -> transposed patch matrix (KH*KW*CIN, N*H*W)."""
    n, c, h, w = x_nchw.shape
    xp = jnp.pad(x_nchw, ((0, 0), (0, 0), (PAD, PAD), (PAD, PAD)))
    cols = [xp[:, :, kh:kh + h, kw:kw + w]                   # (N, CIN, H, W)
            for kh in range(KH) for kw in range(KW)]
    pt = jnp.stack(cols, axis=0)                             # (KH*KW, N, CIN, H, W)
    pt = jnp.transpose(pt, (0, 2, 1, 3, 4))                  # (KH*KW, CIN, N, H, W)
    return pt.reshape(KH * KW * c, n * h * w)                # (KSZ, M)


def track_layer_forward(x_nchw, w_oihw, bias, running_mean, running_var,
                        momentum=BN_MOMENTUM):
    """Returns (x1 in NCHW, new_running_mean, new_running_var)."""
    pT = _im2col_T(x_nchw)                                          # (KSZ, M)
    wT = jnp.transpose(w_oihw, (0, 2, 3, 1)).reshape(COUT, KSZ)     # (COUT, KSZ)
    b2 = bias.reshape(COUT, 1)

    outT, bmean, bm2 = pl.pallas_call(
        conv_track_kernel,
        out_shape=(
            jax.ShapeDtypeStruct((COUT, M), x_nchw.dtype),
            jax.ShapeDtypeStruct((NB, COUT, 1), jnp.float32),
            jax.ShapeDtypeStruct((NB, COUT, 1), jnp.float32),
        ),
        grid=(NB,),
        in_specs=[
            pl.BlockSpec((COUT, KSZ), lambda i: (0, 0)),
            pl.BlockSpec((KSZ, BM), lambda i: (0, i)),
            pl.BlockSpec((COUT, 1), lambda i: (0, 0)),
        ],
        out_specs=(
            pl.BlockSpec((COUT, BM), lambda i: (0, i)),
            pl.BlockSpec((1, COUT, 1), lambda i: (i, 0, 0)),
            pl.BlockSpec((1, COUT, 1), lambda i: (i, 0, 0)),
        ),
        compiler_params=pltpu.CompilerParams(
            dimension_semantics=("parallel",)),
    )(wT, pT, b2)

    # Back to NCHW for the PyTorch-equivalent return value.
    x1 = jnp.transpose(outT.reshape(COUT, N, H, W), (1, 0, 2, 3))

    # Combine per-block stats (Chan's parallel-variance; equal block sizes).
    cnt = float(M)
    bmean = bmean[:, :, 0]                                   # (NB, COUT)
    bm2 = bm2[:, :, 0]                                       # (NB, COUT)
    batch_mean = jnp.mean(bmean, axis=0)                     # (COUT,)
    m2_total = jnp.sum(bm2, axis=0) + BM * jnp.sum(
        (bmean - batch_mean[None, :]) ** 2, axis=0)
    unbiased_var = m2_total / (cnt - 1.0)                    # BN uses unbiased var

    # nn.BatchNorm2d running-stat update (training mode); forward output unaffected.
    new_rm = (1.0 - momentum) * running_mean + momentum * batch_mean
    new_rv = (1.0 - momentum) * running_var + momentum * unbiased_var
    return x1, new_rm, new_rv


if __name__ == "__main__":
    key = jax.random.PRNGKey(0)
    kx, kw, kb = jax.random.split(key, 3)

    x = jax.random.normal(kx, (N, CIN, H, W), dtype=jnp.float32)
    # Deterministic synthetic parameters (PyTorch-ish uniform init scale).
    fan_in = CIN * KH * KW
    bound = 1.0 / np.sqrt(fan_in)
    w = jax.random.uniform(kw, (COUT, CIN, KH, KW), dtype=jnp.float32,
                           minval=-bound, maxval=bound)
    b = jax.random.uniform(kb, (COUT,), dtype=jnp.float32,
                           minval=-bound, maxval=bound)
    running_mean = jnp.zeros((COUT,), jnp.float32)           # BatchNorm2d init
    running_var = jnp.ones((COUT,), jnp.float32)

    x1, rm, rv = jax.jit(track_layer_forward)(x, w, b, running_mean, running_var)
    jax.block_until_ready((x1, rm, rv))

    # Reference conv (NCHW, OIHW) to validate the kernel's forward output.
    ref = lax.conv_general_dilated(
        x, w, window_strides=(1, 1), padding=((PAD, PAD), (PAD, PAD)),
        dimension_numbers=("NCHW", "OIHW", "NCHW")) + b.reshape(1, COUT, 1, 1)
    np.testing.assert_allclose(np.asarray(x1), np.asarray(ref),
                               rtol=1e-4, atol=1e-4)

    # Reference BN running stats after one training-mode forward.
    ref_np = np.asarray(ref)
    bm_ref = ref_np.mean(axis=(0, 2, 3))
    bv_ref = ref_np.var(axis=(0, 2, 3), ddof=1)
    np.testing.assert_allclose(np.asarray(rm), 0.9 * 0.0 + 0.1 * bm_ref,
                               rtol=1e-4, atol=1e-4)
    np.testing.assert_allclose(np.asarray(rv), 0.9 * 1.0 + 0.1 * bv_ref,
                               rtol=1e-4, atol=1e-4)

    print("KERNEL_OK")
</pallas_src>

<mosaic_0001>
module attributes {stable_mosaic.version = 11 : i64} {
  func.func @conv_track_kernel(%arg0: i32, %arg1: memref<8x36xf32, #tpu.memory_space<vmem>>, %arg2: memref<36x256xf32, #tpu.memory_space<vmem>>, %arg3: memref<8x1xf32, #tpu.memory_space<vmem>>, %arg4: memref<8x256xf32, #tpu.memory_space<vmem>>, %arg5: memref<1x8x1xf32, #tpu.memory_space<vmem>>, %arg6: memref<1x8x1xf32, #tpu.memory_space<vmem>>) attributes {dimension_semantics = [#tpu.dimension_semantics<parallel>], iteration_bounds = array<i64: 2>, scalar_prefetch = 0 : i64, scratch_operands = 0 : i64, tpu.core_type = #tpu.core_type<tc>, window_params = [{pipeline_mode = #tpu.pipeline_mode<synchronous>, transform_indices = @transform_0, window_bounds = array<i64: 8, 36>}, {transform_indices = @transform_1, window_bounds = array<i64: 36, 256>}, {pipeline_mode = #tpu.pipeline_mode<synchronous>, transform_indices = @transform_2, window_bounds = array<i64: 8, 1>}, {transform_indices = @transform_3, window_bounds = array<i64: 8, 256>}, {transform_indices = @transform_4, window_bounds = array<i64: 1, 8, 1>}, {transform_indices = @transform_5, window_bounds = array<i64: 1, 8, 1>}]} {
    %c0 = arith.constant 0 : index
    %c0_0 = arith.constant 0 : index
    %0 = vector.load %arg1[%c0, %c0_0] : memref<8x36xf32, #tpu.memory_space<vmem>>, vector<8x36xf32>
    %c0_1 = arith.constant 0 : index
    %c0_2 = arith.constant 0 : index
    %1 = vector.load %arg2[%c0_1, %c0_2] : memref<36x256xf32, #tpu.memory_space<vmem>>, vector<36x256xf32>
    %cst = arith.constant dense<0.000000e+00> : vector<8x256xf32>
    %2 = tpu.matmul %0, %1, %cst {dimension_numbers = #tpu.dot_dimension_numbers<[1], [0], [0], [1], [0, 0, 1, 1], [], []>} : vector<8x36xf32>, vector<36x256xf32>, vector<8x256xf32> -> vector<8x256xf32>
    %c0_3 = arith.constant 0 : index
    %c0_4 = arith.constant 0 : index
    %3 = vector.load %arg3[%c0_3, %c0_4] : memref<8x1xf32, #tpu.memory_space<vmem>>, vector<8x1xf32>
    %4 = vector.broadcast %3 : vector<8x1xf32> to vector<8x256xf32>
    %5 = arith.addf %2, %4 : vector<8x256xf32>
    %c0_5 = arith.constant 0 : index
    %c0_6 = arith.constant 0 : index
    %6 = vector.load %arg4[%c0_5, %c0_6] : memref<8x256xf32, #tpu.memory_space<vmem>>, vector<8x256xf32>
    tpu.vector_store %arg4[%c0_5, %c0_6], %5 {strides = array<i32>} : memref<8x256xf32, #tpu.memory_space<vmem>>, vector<8x256xf32>,
    %cst_7 = arith.constant dense<0.000000e+00> : vector<8xf32>
    %7 = vector.multi_reduction <add>, %5, %cst_7 [1] : vector<8x256xf32> to vector<8xf32>
    %8 = vector.shape_cast %7 : vector<8xf32> to vector<8x1xf32>
    %cst_8 = arith.constant 3.906250e-03 : f32
    %9 = vector.broadcast %cst_8 : f32 to vector<8x1xf32>
    %10 = arith.mulf %8, %9 : vector<8x1xf32>
    %11 = vector.broadcast %10 : vector<8x1xf32> to vector<8x256xf32>
    %12 = arith.subf %5, %11 : vector<8x256xf32>
    %13 = arith.mulf %12, %12 : vector<8x256xf32>
    %cst_9 = arith.constant dense<0.000000e+00> : vector<8xf32>
    %14 = vector.multi_reduction <add>, %13, %cst_9 [1] : vector<8x256xf32> to vector<8xf32>
    %15 = vector.shape_cast %14 : vector<8xf32> to vector<8x1xf32>
    %c0_10 = arith.constant 0 : index
    %c0_11 = arith.constant 0 : index
    %c0_12 = arith.constant 0 : index
    %16 = vector.load %arg5[%c0_10, %c0_11, %c0_12] : memref<1x8x1xf32, #tpu.memory_space<vmem>>, vector<1x8x1xf32>
    %17 = vector.shape_cast %16 : vector<1x8x1xf32> to vector<8x1xf32>
    %18 = vector.shape_cast %10 : vector<8x1xf32> to vector<1x8x1xf32>
    tpu.vector_store %arg5[%c0_10, %c0_11, %c0_12], %18 {strides = array<i32>} : memref<1x8x1xf32, #tpu.memory_space<vmem>>, vector<1x8x1xf32>,
    %c0_13 = arith.constant 0 : index
    %c0_14 = arith.constant 0 : index
    %c0_15 = arith.constant 0 : index
    %19 = vector.load %arg6[%c0_13, %c0_14, %c0_15] : memref<1x8x1xf32, #tpu.memory_space<vmem>>, vector<1x8x1xf32>
    %20 = vector.shape_cast %19 : vector<1x8x1xf32> to vector<8x1xf32>
    %21 = vector.shape_cast %15 : vector<8x1xf32> to vector<1x8x1xf32>
    tpu.vector_store %arg6[%c0_13, %c0_14, %c0_15], %21 {strides = array<i32>} : memref<1x8x1xf32, #tpu.memory_space<vmem>>, vector<1x8x1xf32>,
    return
  }
  func.func @transform_0(%arg0: i32) -> (i32, i32) {
    %c0_i32 = arith.constant 0 : i32
    %c0_i32_0 = arith.constant 0 : i32
    %c0_i32_1 = arith.constant 0 : i32
    return %c0_i32, %c0_i32_0 : i32, i32
  }
  func.func @transform_1(%arg0: i32) -> (i32, i32) {
    %c0_i32 = arith.constant 0 : i32
    %c0_i32_0 = arith.constant 0 : i32
    return %c0_i32, %arg0 : i32, i32
  }
  func.func @transform_2(%arg0: i32) -> (i32, i32) {
    %c0_i32 = arith.constant 0 : i32
    %c0_i32_0 = arith.constant 0 : i32
    %c0_i32_1 = arith.constant 0 : i32
    return %c0_i32, %c0_i32_0 : i32, i32
  }
  func.func @transform_3(%arg0: i32) -> (i32, i32) {
    %c0_i32 = arith.constant 0 : i32
    %c0_i32_0 = arith.constant 0 : i32
    return %c0_i32, %arg0 : i32, i32
  }
  func.func @transform_4(%arg0: i32) -> (i32, i32, i32) {
    %c0_i32 = arith.constant 0 : i32
    %c0_i32_0 = arith.constant 0 : i32
    %c0_i32_1 = arith.constant 0 : i32
    return %arg0, %c0_i32, %c0_i32_0 : i32, i32, i32
  }
  func.func @transform_5(%arg0: i32) -> (i32, i32, i32) {
    %c0_i32 = arith.constant 0 : i32
    %c0_i32_0 = arith.constant 0 : i32
    %c0_i32_1 = arith.constant 0 : i32
    return %arg0, %c0_i32, %c0_i32_0 : i32, i32, i32
  }
}

</mosaic_0001>

<bundles_post_ra>
// kernel: track_layer_forward.1
= control target key start
LH: loop header
LB: loop body
LE: loop exit
PB: predicated region body
PF: predicated region fallthrough
CT: control target
= control target key end

     0   :  { %s635_s18 = smov 0   ;;  %s637_s19 = smov 0   ;;  %s702_s0 = inlined_call_operand.vmem [shape: f32[8,36], index: 0, kind: input, shape index: {}]   ;;  %s703_s1 = inlined_call_operand.vmem [shape: f32[36,512], index: 1, kind: input, shape index: {}]   ;;  %s704_s2 = inlined_call_operand.vmem [shape: f32[8,1], index: 2, kind: input, shape index: {}]   ;;  %s705_s3 = inlined_call_operand.vmem [shape: f32[8,512], index: 3, kind: output, shape index: {0}]   ;;  %s706_s4 = inlined_call_operand.vmem [shape: f32[2,8,1], index: 4, kind: output, shape index: {1}]   ;;  %s707_s5 = inlined_call_operand.vmem [shape: f32[2,8,1], index: 5, kind: output, shape index: {2}]  }
   0x1   :  { %s639_s20 = smov 0  }
   0x2 LB: > { %s651_s21 = sadd.s32 4294967295, %s601_s20   ;;  %s654_s22 = sadd.s32 1, %s601_s20   ;;  %s601_s20 = sphi %s639_s20, %s710_s20   ;;  %s597_s19 = sphi %s637_s19, %s709_s19   ;;  %s593_s18 = sphi %s635_s18, %s708_s18  }
   0x3   : > { %s41_s23 = ssub.s32 %s601_s20, %s654_s22  ;;  %s44_s24 = sadd.s32 1, %s597_s19 }
   0x4   : > { %p42_p0 = scmp.eq.s32.totalorder %s41_s23, 0  ;;  %p51_p1 = scmp.ne.s32.totalorder %s597_s19, %s593_s18 }
   0x5   : > { %p52_p2 = scmp.eq.s32.totalorder %s601_s20, 0  ;;  %p528_p4 = scmp.ge.s32.totalorder %s601_s20, 2 }
   0x6   : > { %s663_s25 = scalar_select %p42_p0, %s597_s19, %s44_s24  }
   0x7   : > { %p53_p3 = por %p52_p2, %p51_p1  ;;  %182 = sbr.rel (%p528_p4) target bundleno = 23 (0x17), region = 24 }
   0xe   : > { %185 = sbr.rel (!%p53_p3) target bundleno = 23 (0x17), region = 28  ;;  %s187_s26 = sand.u32 (%p53_p3), 1, %s597_s19  }
   0xf   : > { %s541_s27 = sshll.u32 (%p53_p3), %s601_s20, 4  ;;  %s550_s28 = smul.u32 (%p53_p3), 80, %s187_s26 }
  0x10   : > { %s192_s6 = scalar_lea.vmem (%p53_p3), %s703_s1, %s541_s27 }
  0x11   : > { %v205_v0 = vld [vmem:[%s192_s6] sm:$0xff] (%p53_p3)  ;;  %v207_v1 = vld [vmem:[%s192_s6 + $0x8] sm:$0xff] (%p53_p3)  ;;  %s189_s7 = scalar_lea.vmem (%p53_p3), [#allocation2], %s550_s28 }
  0x12   : > { %v209_v2 = vld [vmem:[%s192_s6 + $0x20] sm:$0xff] (%p53_p3)  ;;  %v211_v3 = vld [vmem:[%s192_s6 + $0x28] sm:$0xff] (%p53_p3)  ;;  %206 = vst [vmem:[%s189_s7] sm:$0xff] (%p53_p3), %v205_v0  ;;  %208 = vst [vmem:[%s189_s7 + $0x8] sm:$0xff] (%p53_p3), %v207_v1 }
  0x13   : > { %v213_v4 = vld [vmem:[%s192_s6 + $0x40] sm:$0xff] (%p53_p3)  ;;  %v215_v5 = vld [vmem:[%s192_s6 + $0x48] sm:$0xff] (%p53_p3)  ;;  %210 = vst [vmem:[%s189_s7 + $0x10] sm:$0xff] (%p53_p3), %v209_v2  ;;  %212 = vst [vmem:[%s189_s7 + $0x18] sm:$0xff] (%p53_p3), %v211_v3 }
  0x14   : > { %214 = vst [vmem:[%s189_s7 + $0x20] sm:$0xff] (%p53_p3), %v213_v4  ;;  %216 = vst [vmem:[%s189_s7 + $0x28] sm:$0xff] (%p53_p3), %v215_v5  ;;  %v217_v6 = vld [vmem:[%s192_s6 + $0x60] sm:$0xff] (%p53_p3)  ;;  %v219_v7 = vld [vmem:[%s192_s6 + $0x68] sm:$0xff] (%p53_p3) }
  0x15   : > { %v221_v8 = vld [vmem:[%s192_s6 + $0x80] sm:$0xff]  ;;  %218 = vst [vmem:[%s189_s7 + $0x30] sm:$0xff] %v217_v6  ;;  %220 = vst [vmem:[%s189_s7 + $0x38] sm:$0xff] %v219_v7  ;;  %v223_v9 = vld [vmem:[%s192_s6 + $0x88] sm:$0xff] }
  0x16   : > { %222 = vst [vmem:[%s189_s7 + $0x40] sm:$0xff] %v221_v8  ;;  %224 = vst [vmem:[%s189_s7 + $0x48] sm:$0xff] %v223_v9 }
  0x17 PF: > { %p531_p5 = scmp.ge.s32.totalorder %s601_s20, 1  ;;  %p229_p6 = scmp.lt.s32.totalorder %s601_s20, 3 }
  0x19   : > { %p230_p7 = pnand %p531_p5, %p229_p6 }
  0x1a   : > { %s236_s8 = sand.u32 (!%p230_p7), 1, %s593_s18   ;;  %v603_v10 = vmov (!%p230_p7), 0.0   ;;  %v604_v11 = vmov (!%p230_p7), 0   ;;  %v297_v12 = vld [vmem:[%s704_s2] sm:$0xff] (!%p230_p7)  ;;  %vm307_vm0 = vcmask (!%p230_p7), 1043456   ;;  %vm303_vm1 = vcmask (!%p230_p7), 293888  }
  0x1b   : > { %233 = sbr.rel (%p230_p7) target bundleno = 554 (0x22a), region = 51  ;;  %378 = vmatprep.mubr.f32.mxu0 (!%p230_p7), %v603_v10  ;;  %578 = vset.pattern.permute.xlu0 (!%p230_p7), %v604_v11  ;;  %v286_v27 = vld [vmem:[%s702_s0] sm:$0xff] (!%p230_p7)  ;;  %s532_s15 = sshll.u32 (!%p230_p7), %s651_s21, 1  ;;  %vm398_vm2 = vcmask (!%p230_p7), 7168  }
  0x1c   : > { %s551_s9 = smul.u32 (!%p230_p7), 80, %s236_s8  ;;  %300 = vperm.xlu0 (!%p230_p7), %578, %v297_v12   ;;  %p273_p8 = scmp.lt.s32.totalorder (!%p230_p7), %s532_s15, 3 }
  0x1d   : > { %p278_p9 = scmp.lt.s32.totalorder (!%p230_p7), %s651_s21, 1 }
  0x1e   : > { %s238_s12 = scalar_lea.vmem (!%p230_p7), [#allocation2], %s551_s9 }
  0x1f   : > { %v288_v13 = vld [vmem:[%s238_s12 + $0x8] sm:$0xff] (!%p230_p7)  ;;  %v290_v14 = vld [vmem:[%s238_s12 + $0x18] sm:$0xff] (!%p230_p7)  ;;  %v287_v15 = vld [vmem:[%s238_s12] sm:$0xff] (!%p230_p7) }
  0x20   : > { %v542_v16 = vpack.c.bf16 (!%p230_p7), %v290_v14, %v288_v13  ;;  %v289_v17 = vld [vmem:[%s238_s12 + $0x10] sm:$0xff] (!%p230_p7)  ;;  %v292_v18 = vld [vmem:[%s238_s12 + $0x28] sm:$0xff] (!%p230_p7)  ;;  %v294_v19 = vld [vmem:[%s238_s12 + $0x38] sm:$0xff] (!%p230_p7) }
  0x21   : > { %v544_v20 = vpack.c.bf16 (!%p230_p7), %v289_v17, %v287_v15  ;;  %v546_v21 = vpack.c.bf16 (!%p230_p7), %v294_v19, %v292_v18  ;;  %v291_v22 = vld [vmem:[%s238_s12 + $0x20] sm:$0xff] (!%p230_p7)  ;;  %v293_v23 = vld [vmem:[%s238_s12 + $0x30] sm:$0xff] (!%p230_p7)  ;;  %v296_v25 = vld [vmem:[%s238_s12 + $0x48] sm:$0xf] (!%p230_p7) }
  0x22   : > { %543 = vmatprep.subr.bf16.mxu0 %v542_v16  ;;  %v548_v24 = vpack.c.bf16 %v293_v23, %v291_v22  ;;  %v295_v26 = vld [vmem:[%s238_s12 + $0x40] sm:$0xf]  ;;  %s712_s15 = smov (!%p273_p8, %s532_s15), 3  ;;  %s714_s21 = smov (!%p278_p9, %s651_s21), 1 }
  0x23   : > { %545 = vmatpush1.bf16.msra.mxu0 %v544_v20  ;;  %s533_s16 = sshll.u32 %s712_s15, 3  ;;  %s534_s23 = sshll.u32 %s714_s21, 3 }
  0x24   : > { %547 = vmatprep.subr.bf16.mxu0 %v546_v21  ;;  %s276_s20 = scalar_lea.vmem %s705_s3, %s533_s16  ;;  %s281_s27 = scalar_lea.vmem %s706_s4, %s534_s23 }
  0x25   : > { %s285_s30 = scalar_lea.vmem %s707_s5, %s534_s23 }
  0x27   : > { %549 = vmatpush1.bf16.msra.mxu0 %v548_v24 }
  0x28   : > { %536 = vmatprep.subr.msk.mxu0 %vm307_vm0, %v296_v25 }
  0x2b   : > { %537 = vmatpush1.msk.msra.mxu0 %vm307_vm0, %v295_v26 }
  0x2c   : > { %538 = vmatmul.mubr.msk.f32.vlgmr.msra.gmra.mrb[0].mxu0 %vm303_vm1, %v286_v27 }
  0x9b   : > { %v301_v28 = vpop.permute.xlu0 %300 }
  0xff   : > { %v380_v29 = vpop.f32.mrb[0].mxu0 }
 0x100   : > { %v381_v30 = vadd.f32 %v380_v29, %v301_v28  ;;  %v382_v31 = vpop.f32.mrb[1].mxu0 }
 0x101   : > { %v383_v32 = vadd.f32 %v382_v31, %v301_v28 }
 0x102   : > { %385 = vst [vmem:[%s276_s20] sm:$0xff] %v381_v30 }
 0x103   : > { %386 = vst [vmem:[%s276_s20 + $0x8] sm:$0xff] %v383_v32  ;;  %v387_v33 = vadd.f32 %v383_v32, %v381_v30 }
 0x105   : > { %388 = vadd.xlane.f32.xlu0 %v387_v33 }
 0x192   : > { %v389_v34 = vpop.xlane.xlu0 %388 }
 0x193   : > { %v390_v35 = vmul.f32 0.00390625, %v389_v34 }
 0x195   : > { %v391_v36 = vsub.f32 %v381_v30, %v390_v35  ;;  %v392_v37 = vsub.f32 %v383_v32, %v390_v35  ;;  %399 = vst.msk [vmem:[%s281_s27] sm:$0xff] %vm398_vm2, %v390_v35 }
 0x197   : > { %v393_v38 = vmul.f32 %v391_v36, %v391_v36  ;;  %v394_v39 = vmul.f32 %v392_v37, %v392_v37 }
 0x199   : > { %v395_v40 = vadd.f32 %v394_v39, %v393_v38 }
 0x19b   : > { %396 = vadd.xlane.f32.xlu1 %v395_v40 }
 0x228   : > { %v397_v41 = vpop.xlane.xlu1 %396 }
 0x229   : > { %400 = vst.msk [vmem:[%s285_s30] sm:$0xff] %vm398_vm2, %v397_v41 }
 0x22a PF: > { %p13_p10 = scmp.ge.s32.totalorder %s654_s22, 4   ;;  %s708_s18 = smov %s597_s19 }
 0x22b   : > { %s709_s19 = smov %s663_s25  ;;  %s710_s20 = smov %s654_s22 }
 0x22c   :  { %15 = sbr.rel (!%p13_p10) target bundleno = 2 (0x2), region = 114 }

</bundles_post_ra>
